<compile_context>
chip_gen: v6e
topology: v6e:2x2x1
jax: 0.10.0
libtpu: 0.0.40
codegen_flags: <defaults>
</compile_context>

<pallas_src>
import jax
import jax.numpy as jnp
from jax.experimental import pallas as pl
from jax.experimental.pallas import tpu as pltpu


def vgcn_kernel(x_ref, adj_ref, w1_ref, b1_ref, w2_ref, b2_ref, mu_ref, ls_ref):
    # x_ref:  (bb, N, Cin)          adj_ref: (bb, N, N)  any 0/1 dtype
    # w1_ref: (Cin, Hid)            b1_ref:  (1, Hid)
    # w2_ref: (Hid, 2*Cout)  [w_mu || w_ls]   b2_ref: (1, 2*Cout)
    # mu_ref / ls_ref: (bb, N, Cout)
    bb, n, cin = x_ref.shape
    hid = w1_ref.shape[1]
    cout = mu_ref.shape[-1]

    # Single pass over adj: cast to bf16 and set the self-loop diagonal to 1.
    adj = adj_ref[...].astype(jnp.bfloat16)
    row = jax.lax.broadcasted_iota(jnp.int32, (n, n), 0)
    col = jax.lax.broadcasted_iota(jnp.int32, (n, n), 1)
    adj = jnp.where((row == col)[None], jnp.ones((), jnp.bfloat16), adj)

    # Symmetric degree normalization factors (f32 accumulation, exact for 0/1).
    deg = jnp.sum(adj, axis=-1, keepdims=True, dtype=jnp.float32)   # (bb, n, 1)
    deg = jnp.maximum(deg, 1.0)
    dis = jax.lax.rsqrt(deg)                                        # f32

    def feat_matmul(feat, w_ref_):
        # (bb*n, c) @ (c, o) on the MXU: bf16 operands, f32 accumulation.
        c = feat.shape[-1]
        o = w_ref_.shape[1]
        f2 = feat.reshape(bb * n, c).astype(jnp.bfloat16)
        w = w_ref_[...].astype(jnp.bfloat16)
        out2 = jnp.dot(f2, w, preferred_element_type=jnp.float32)
        return out2.reshape(bb, n, o)

    def adj_matmul(feat):
        # adj @ feat on the MXU: bf16 operands, f32 accumulation.
        return jnp.einsum("bnm,bmc->bnc", adj, feat.astype(jnp.bfloat16),
                          preferred_element_type=jnp.float32)

    def gcn_conv(feat, w_ref_, b_ref_):
        # A~ @ (feat @ W) + b, ordered by 128-lane tile counts so the O(N^2)
        # propagation and the `dis` row scalings run at the narrower width.
        c_in = feat.shape[-1]
        c_out = w_ref_.shape[1]
        prop_first = (pl.cdiv(c_in, 128), c_in) <= (pl.cdiv(c_out, 128), c_out)
        if prop_first:
            # dis * (adj @ (dis*feat)) computed at width c_in, then @ W.
            p = adj_matmul(feat * dis) * dis
            return feat_matmul(p, w_ref_) + b_ref_[...]
        # feat @ W first; propagation and both dis scalings at width c_out.
        fw = feat_matmul(feat, w_ref_)
        return adj_matmul(fw * dis) * dis + b_ref_[...]

    x = x_ref[...]
    h1 = jnp.maximum(gcn_conv(x, w1_ref, b1_ref), 0.0)       # (bb, n, hid) f32
    out2 = gcn_conv(h1, w2_ref, b2_ref)                      # (bb, n, 2*cout) f32
    mu_ref[...] = out2[..., :cout].astype(mu_ref.dtype)
    ls_ref[...] = out2[..., cout:].astype(ls_ref.dtype)


def variational_gcn_encoder_forward(x, adj, w1, b1, w_mu, b_mu, w_ls, b_ls,
                                    *, block_b=None):
    """x: [B,N,Cin] f32; adj: [B,N,N] (0/1, any dtype incl. int8); w1: [Cin,Hid];
    b1: [1,Hid]; w_mu/w_ls: [Hid,Cout]; b_mu/b_ls: [1,Cout]. Returns (mu, logstd)."""
    B, N, Cin = x.shape
    Hid = w1.shape[1]
    Cout = w_mu.shape[1]
    adj_itemsize = adj.dtype.itemsize
    x_itemsize = x.dtype.itemsize

    # Fuse mu / logstd projections into one matmul (tiny host-side concat).
    w2 = jnp.concatenate([w_mu, w_ls], axis=1)      # (Hid, 2*Cout)
    b2 = jnp.concatenate([b_mu, b_ls], axis=1)      # (1, 2*Cout)

    # ---- generation-aware VMEM budgeting -----------------------------------
    try:
        vmem_cap = int(pltpu.get_tpu_info().vmem_capacity_bytes)
    except Exception:                                # pragma: no cover
        vmem_cap = 64 * 2**20                        # conservative (v7x per-TC)
    vmem_limit_cap = (vmem_cap * 3) // 4             # ~48 MiB v7x, ~96 MiB v5e/v6e
    block_budget = int(vmem_cap * 0.55)              # headroom for compiler scratch

    param_bytes = 2 * (Cin * Hid + Hid + Hid * 2 * Cout + 2 * Cout) * 4

    def block_bytes(bb):
        # BlockSpec-managed buffers are double-buffered (x2); in-kernel
        # intermediates are single-buffered.
        managed = 2 * (bb * N * Cin * x_itemsize
                       + bb * N * N * adj_itemsize
                       + 2 * bb * N * Cout * x_itemsize)
        work = (bb * N * N * 2                               # bf16 adj (self-loops)
                + bb * N * 1 * 4                             # dis
                + bb * N * max(Cin, Hid, 2 * Cout) * 2       # bf16 matmul operand
                + 3 * bb * N * max(Hid, 2 * Cout) * 4)       # f32 prop / h1 / out2
        return managed + param_bytes + work

    # ---- choose graphs-per-step (bb): fit VMEM, keep >=2 steps, divide B ----
    if block_b is None:
        per_graph = max(1, block_bytes(1) - block_bytes(0))
        bb = max(1, min(B, (block_budget - block_bytes(0)) // per_graph))
        if block_bytes(1) > block_budget:
            # TODO(synk): large-N regime needs the row-tiled two-pass kernel.
            bb = 1
        if B >= 2:
            bb = min(bb, max(1, B // 2))     # >=2 grid steps (v7x megacore, overlap)
        while B % bb:                        # divisor of B -> no pad pass over adj
            bb -= 1
    else:
        bb = block_b
        assert B % bb == 0, "block_b must divide the batch size"
    num_blocks = B // bb

    vmem_limit = int(min(max(int(block_bytes(bb) * 1.5), 16 * 2**20),
                         vmem_limit_cap))

    # ---- advisory cost estimate ---------------------------------------------
    prop1_w = min(Cin, Hid)
    prop2_w = min(Hid, 2 * Cout)
    cost = pl.CostEstimate(
        flops=2 * B * N * N * (prop1_w + prop2_w)
              + 2 * B * N * (Cin * Hid + Hid * 2 * Cout),
        transcendentals=B * N,
        bytes_accessed=B * N * N * adj_itemsize
                       + B * N * Cin * x_itemsize
                       + 2 * B * N * Cout * x_itemsize
                       + param_bytes * 2,
    )

    mu, logstd = pl.pallas_call(
        vgcn_kernel,
        out_shape=(
            jax.ShapeDtypeStruct((B, N, Cout), x.dtype),
            jax.ShapeDtypeStruct((B, N, Cout), x.dtype),
        ),
        grid=(num_blocks,),
        in_specs=[
            pl.BlockSpec((bb, N, Cin), lambda b: (b, 0, 0)),
            pl.BlockSpec((bb, N, N), lambda b: (b, 0, 0)),
            pl.BlockSpec((Cin, Hid), lambda b: (0, 0)),
            pl.BlockSpec((1, Hid), lambda b: (0, 0)),
            pl.BlockSpec((Hid, 2 * Cout), lambda b: (0, 0)),
            pl.BlockSpec((1, 2 * Cout), lambda b: (0, 0)),
        ],
        out_specs=(
            pl.BlockSpec((bb, N, Cout), lambda b: (b, 0, 0)),
            pl.BlockSpec((bb, N, Cout), lambda b: (b, 0, 0)),
        ),
        compiler_params=pltpu.CompilerParams(
            dimension_semantics=("parallel",),
            vmem_limit_bytes=vmem_limit,
        ),
        cost_estimate=cost,
    )(x, adj, w1, b1, w2, b2)

    return mu, logstd


# ------------------------- pure-JAX f32 reference ---------------------------

def _dense_gcn_ref(h, adj, w, b):
    B, N, _ = adj.shape
    eye = jnp.eye(N, dtype=bool)
    adj = jnp.where(eye[None], 1.0, adj)
    deg = jnp.maximum(adj.sum(-1), 1.0)
    dis = deg ** -0.5
    adj_n = dis[:, :, None] * adj * dis[:, None, :]
    hw = jnp.einsum("bnc,co->bno", h, w)
    return jnp.einsum("bnm,bmo->bno", adj_n, hw) + b


def _reference(x, adj, w1, b1, w_mu, b_mu, w_ls, b_ls):
    h = jax.nn.relu(_dense_gcn_ref(x, adj, w1, b1))
    return (_dense_gcn_ref(h, adj, w_mu, b_mu),
            _dense_gcn_ref(h, adj, w_ls, b_ls))


if __name__ == "__main__":
    B, N = 2, 16
    in_channels, out_channels = 4, 16
    hid = 2 * out_channels

    key = jax.random.PRNGKey(0)
    kx, ka, k1, k2, k3, kb1, kb2, kb3 = jax.random.split(key, 8)

    x = jax.random.normal(kx, (B, N, in_channels), dtype=jnp.float32)
    # 0/1 adjacency produced directly as int8 (cast fused with the producer);
    # the kernel accepts any dtype without a standalone wrapper cast pass.
    adj_i8 = (jax.random.uniform(ka, (B, N, N)) > 0.7).astype(jnp.int8)
    adj_f32 = adj_i8.astype(jnp.float32)          # reference path only

    def glorot(k, fan_in, fan_out):
        limit = (6.0 / (fan_in + fan_out)) ** 0.5
        return jax.random.uniform(k, (fan_in, fan_out), minval=-limit,
                                  maxval=limit, dtype=jnp.float32)

    w1 = glorot(k1, in_channels, hid)
    w_mu = glorot(k2, hid, out_channels)
    w_ls = glorot(k3, hid, out_channels)
    b1 = 0.1 * jax.random.normal(kb1, (1, hid), dtype=jnp.float32)
    b_mu = 0.1 * jax.random.normal(kb2, (1, out_channels), dtype=jnp.float32)
    b_ls = 0.1 * jax.random.normal(kb3, (1, out_channels), dtype=jnp.float32)

    mu, logstd = variational_gcn_encoder_forward(
        x, adj_i8, w1, b1, w_mu, b_mu, w_ls, b_ls)
    jax.block_until_ready((mu, logstd))

    mu_ref, ls_ref = _reference(x, adj_f32, w1, b1, w_mu, b_mu, w_ls, b_ls)
    assert mu.shape == (B, N, out_channels)
    assert logstd.shape == (B, N, out_channels)
    # bf16 MXU operands with f32 accumulation -> loose-ish tolerance vs f32 ref
    assert jnp.allclose(mu, mu_ref, atol=5e-2, rtol=5e-2), \
        float(jnp.max(jnp.abs(mu - mu_ref)))
    assert jnp.allclose(logstd, ls_ref, atol=5e-2, rtol=5e-2), \
        float(jnp.max(jnp.abs(logstd - ls_ref)))

    print("KERNEL_OK")
</pallas_src>

<mosaic_0001>
module attributes {stable_mosaic.version = 11 : i64} {
  func.func @vgcn_kernel(%arg0: i32, %arg1: memref<1x16x4xf32, #tpu.memory_space<vmem>>, %arg2: memref<1x16x16xi8, #tpu.memory_space<vmem>>, %arg3: memref<4x32xf32, #tpu.memory_space<vmem>>, %arg4: memref<1x32xf32, #tpu.memory_space<vmem>>, %arg5: memref<32x32xf32, #tpu.memory_space<vmem>>, %arg6: memref<1x32xf32, #tpu.memory_space<vmem>>, %arg7: memref<1x16x16xf32, #tpu.memory_space<vmem>>, %arg8: memref<1x16x16xf32, #tpu.memory_space<vmem>>) attributes {dimension_semantics = [#tpu.dimension_semantics<parallel>], iteration_bounds = array<i64: 2>, scalar_prefetch = 0 : i64, scratch_operands = 0 : i64, tpu.core_type = #tpu.core_type<tc>, window_params = [{transform_indices = @transform_0, window_bounds = array<i64: 1, 16, 4>}, {transform_indices = @transform_1, window_bounds = array<i64: 1, 16, 16>}, {pipeline_mode = #tpu.pipeline_mode<synchronous>, transform_indices = @transform_2, window_bounds = array<i64: 4, 32>}, {pipeline_mode = #tpu.pipeline_mode<synchronous>, transform_indices = @transform_3, window_bounds = array<i64: 1, 32>}, {pipeline_mode = #tpu.pipeline_mode<synchronous>, transform_indices = @transform_4, window_bounds = array<i64: 32, 32>}, {pipeline_mode = #tpu.pipeline_mode<synchronous>, transform_indices = @transform_5, window_bounds = array<i64: 1, 32>}, {transform_indices = @transform_6, window_bounds = array<i64: 1, 16, 16>}, {transform_indices = @transform_7, window_bounds = array<i64: 1, 16, 16>}]} {
    %c0 = arith.constant 0 : index
    %c0_0 = arith.constant 0 : index
    %c0_1 = arith.constant 0 : index
    %0 = vector.load %arg2[%c0, %c0_0, %c0_1] : memref<1x16x16xi8, #tpu.memory_space<vmem>>, vector<1x16x16xi8>
    %1 = arith.sitofp %0 : vector<1x16x16xi8> to vector<1x16x16xbf16>
    %2 = tpu.iota {dimensions = array<i32: 0>} : vector<16x16xi32>
    %3 = tpu.iota {dimensions = array<i32: 1>} : vector<16x16xi32>
    %4 = arith.cmpi eq, %2, %3 : vector<16x16xi32>
    %5 = vector.shape_cast %4 : vector<16x16xi1> to vector<1x16x16xi1>
    %cst = arith.constant 1.000000e+00 : bf16
    %6 = vector.broadcast %cst : bf16 to vector<1x16x16xbf16>
    %7 = arith.select %5, %6, %1 : vector<1x16x16xi1>, vector<1x16x16xbf16>
    %8 = arith.extf %7 : vector<1x16x16xbf16> to vector<1x16x16xf32>
    %cst_2 = arith.constant dense<0.000000e+00> : vector<1x16xf32>
    %9 = vector.multi_reduction <add>, %8, %cst_2 [2] : vector<1x16x16xf32> to vector<1x16xf32>
    %10 = vector.shape_cast %9 : vector<1x16xf32> to vector<1x16x1xf32>
    %cst_3 = arith.constant 1.000000e+00 : f32
    %11 = vector.broadcast %cst_3 : f32 to vector<1x16x1xf32>
    %12 = arith.maximumf %10, %11 : vector<1x16x1xf32>
    %13 = math.rsqrt %12 : vector<1x16x1xf32>
    %c0_4 = arith.constant 0 : index
    %c0_5 = arith.constant 0 : index
    %c0_6 = arith.constant 0 : index
    %14 = vector.load %arg1[%c0_4, %c0_5, %c0_6] : memref<1x16x4xf32, #tpu.memory_space<vmem>>, vector<1x16x4xf32>
    %15 = vector.broadcast %13 : vector<1x16x1xf32> to vector<1x16x4xf32>
    %16 = arith.mulf %14, %15 : vector<1x16x4xf32>
    %17 = arith.truncf %16 : vector<1x16x4xf32> to vector<1x16x4xbf16>
    "tpu.trace_start"() <{level = 10 : i32, message = "bnm,bmc->bnc"}> : () -> ()
    %cst_7 = arith.constant dense<0.000000e+00> : vector<1x16x4xf32>
    %18 = tpu.matmul %7, %17, %cst_7 {dimension_numbers = #tpu.dot_dimension_numbers<[2], [1], [1], [2], [0, 0, 0, 1, 1, 2], [0], [0]>} : vector<1x16x16xbf16>, vector<1x16x4xbf16>, vector<1x16x4xf32> -> vector<1x16x4xf32>
    "tpu.trace_stop"() : () -> ()
    %19 = vector.broadcast %13 : vector<1x16x1xf32> to vector<1x16x4xf32>
    %20 = arith.mulf %18, %19 : vector<1x16x4xf32>
    %21 = vector.shape_cast %20 : vector<1x16x4xf32> to vector<16x4xf32>
    %22 = arith.truncf %21 : vector<16x4xf32> to vector<16x4xbf16>
    %c0_8 = arith.constant 0 : index
    %c0_9 = arith.constant 0 : index
    %23 = vector.load %arg3[%c0_8, %c0_9] : memref<4x32xf32, #tpu.memory_space<vmem>>, vector<4x32xf32>
    %24 = arith.truncf %23 : vector<4x32xf32> to vector<4x32xbf16>
    %cst_10 = arith.constant dense<0.000000e+00> : vector<16x32xf32>
    %25 = tpu.matmul %22, %24, %cst_10 {dimension_numbers = #tpu.dot_dimension_numbers<[1], [0], [0], [1], [0, 0, 1, 1], [], []>} : vector<16x4xbf16>, vector<4x32xbf16>, vector<16x32xf32> -> vector<16x32xf32>
    %26 = vector.shape_cast %25 : vector<16x32xf32> to vector<1x16x32xf32>
    %c0_11 = arith.constant 0 : index
    %c0_12 = arith.constant 0 : index
    %27 = vector.load %arg4[%c0_11, %c0_12] : memref<1x32xf32, #tpu.memory_space<vmem>>, vector<1x32xf32>
    %28 = vector.shape_cast %27 : vector<1x32xf32> to vector<1x1x32xf32>
    %29 = vector.broadcast %28 : vector<1x1x32xf32> to vector<1x16x32xf32>
    %30 = arith.addf %26, %29 : vector<1x16x32xf32>
    %cst_13 = arith.constant 0.000000e+00 : f32
    %31 = vector.broadcast %cst_13 : f32 to vector<1x16x32xf32>
    %32 = arith.maximumf %30, %31 : vector<1x16x32xf32>
    %33 = vector.broadcast %13 : vector<1x16x1xf32> to vector<1x16x32xf32>
    %34 = arith.mulf %32, %33 : vector<1x16x32xf32>
    %35 = arith.truncf %34 : vector<1x16x32xf32> to vector<1x16x32xbf16>
    "tpu.trace_start"() <{level = 10 : i32, message = "bnm,bmc->bnc"}> : () -> ()
    %cst_14 = arith.constant dense<0.000000e+00> : vector<1x16x32xf32>
    %36 = tpu.matmul %7, %35, %cst_14 {dimension_numbers = #tpu.dot_dimension_numbers<[2], [1], [1], [2], [0, 0, 0, 1, 1, 2], [0], [0]>} : vector<1x16x16xbf16>, vector<1x16x32xbf16>, vector<1x16x32xf32> -> vector<1x16x32xf32>
    "tpu.trace_stop"() : () -> ()
    %37 = vector.broadcast %13 : vector<1x16x1xf32> to vector<1x16x32xf32>
    %38 = arith.mulf %36, %37 : vector<1x16x32xf32>
    %39 = vector.shape_cast %38 : vector<1x16x32xf32> to vector<16x32xf32>
    %40 = arith.truncf %39 : vector<16x32xf32> to vector<16x32xbf16>
    %c0_15 = arith.constant 0 : index
    %c0_16 = arith.constant 0 : index
    %41 = vector.load %arg5[%c0_15, %c0_16] : memref<32x32xf32, #tpu.memory_space<vmem>>, vector<32x32xf32>
    %42 = arith.truncf %41 : vector<32x32xf32> to vector<32x32xbf16>
    %cst_17 = arith.constant dense<0.000000e+00> : vector<16x32xf32>
    %43 = tpu.matmul %40, %42, %cst_17 {dimension_numbers = #tpu.dot_dimension_numbers<[1], [0], [0], [1], [0, 0, 1, 1], [], []>} : vector<16x32xbf16>, vector<32x32xbf16>, vector<16x32xf32> -> vector<16x32xf32>
    %44 = vector.shape_cast %43 : vector<16x32xf32> to vector<1x16x32xf32>
    %c0_18 = arith.constant 0 : index
    %c0_19 = arith.constant 0 : index
    %45 = vector.load %arg6[%c0_18, %c0_19] : memref<1x32xf32, #tpu.memory_space<vmem>>, vector<1x32xf32>
    %46 = vector.shape_cast %45 : vector<1x32xf32> to vector<1x1x32xf32>
    %47 = vector.broadcast %46 : vector<1x1x32xf32> to vector<1x16x32xf32>
    %48 = arith.addf %44, %47 : vector<1x16x32xf32>
    %49 = vector.extract_strided_slice %48 {offsets = [0, 0, 0], sizes = [1, 16, 16], strides = [1, 1, 1]} : vector<1x16x32xf32> to vector<1x16x16xf32>
    %c0_20 = arith.constant 0 : index
    %c0_21 = arith.constant 0 : index
    %c0_22 = arith.constant 0 : index
    %50 = vector.load %arg7[%c0_20, %c0_21, %c0_22] : memref<1x16x16xf32, #tpu.memory_space<vmem>>, vector<1x16x16xf32>
    tpu.vector_store %arg7[%c0_20, %c0_21, %c0_22], %49 {strides = array<i32>} : memref<1x16x16xf32, #tpu.memory_space<vmem>>, vector<1x16x16xf32>,
    %51 = vector.extract_strided_slice %48 {offsets = [0, 0, 16], sizes = [1, 16, 16], strides = [1, 1, 1]} : vector<1x16x32xf32> to vector<1x16x16xf32>
    %c0_23 = arith.constant 0 : index
    %c0_24 = arith.constant 0 : index
    %c0_25 = arith.constant 0 : index
    %52 = vector.load %arg8[%c0_23, %c0_24, %c0_25] : memref<1x16x16xf32, #tpu.memory_space<vmem>>, vector<1x16x16xf32>
    tpu.vector_store %arg8[%c0_23, %c0_24, %c0_25], %51 {strides = array<i32>} : memref<1x16x16xf32, #tpu.memory_space<vmem>>, vector<1x16x16xf32>,
    return
  }
  func.func @transform_0(%arg0: i32) -> (i32, i32, i32) {
    %c0_i32 = arith.constant 0 : i32
    %c0_i32_0 = arith.constant 0 : i32
    %c0_i32_1 = arith.constant 0 : i32
    return %arg0, %c0_i32, %c0_i32_0 : i32, i32, i32
  }
  func.func @transform_1(%arg0: i32) -> (i32, i32, i32) {
    %c0_i32 = arith.constant 0 : i32
    %c0_i32_0 = arith.constant 0 : i32
    %c0_i32_1 = arith.constant 0 : i32
    return %arg0, %c0_i32, %c0_i32_0 : i32, i32, i32
  }
  func.func @transform_2(%arg0: i32) -> (i32, i32) {
    %c0_i32 = arith.constant 0 : i32
    %c0_i32_0 = arith.constant 0 : i32
    %c0_i32_1 = arith.constant 0 : i32
    return %c0_i32, %c0_i32_0 : i32, i32
  }
  func.func @transform_3(%arg0: i32) -> (i32, i32) {
    %c0_i32 = arith.constant 0 : i32
    %c0_i32_0 = arith.constant 0 : i32
    %c0_i32_1 = arith.constant 0 : i32
    return %c0_i32, %c0_i32_0 : i32, i32
  }
  func.func @transform_4(%arg0: i32) -> (i32, i32) {
    %c0_i32 = arith.constant 0 : i32
    %c0_i32_0 = arith.constant 0 : i32
    %c0_i32_1 = arith.constant 0 : i32
    return %c0_i32, %c0_i32_0 : i32, i32
  }
  func.func @transform_5(%arg0: i32) -> (i32, i32) {
    %c0_i32 = arith.constant 0 : i32
    %c0_i32_0 = arith.constant 0 : i32
    %c0_i32_1 = arith.constant 0 : i32
    return %c0_i32, %c0_i32_0 : i32, i32
  }
  func.func @transform_6(%arg0: i32) -> (i32, i32, i32) {
    %c0_i32 = arith.constant 0 : i32
    %c0_i32_0 = arith.constant 0 : i32
    %c0_i32_1 = arith.constant 0 : i32
    return %arg0, %c0_i32, %c0_i32_0 : i32, i32, i32
  }
  func.func @transform_7(%arg0: i32) -> (i32, i32, i32) {
    %c0_i32 = arith.constant 0 : i32
    %c0_i32_0 = arith.constant 0 : i32
    %c0_i32_1 = arith.constant 0 : i32
    return %arg0, %c0_i32, %c0_i32_0 : i32, i32, i32
  }
}

</mosaic_0001>

<bundles_post_ra>
// kernel: tpu_custom_call.1
= control target key start
LH: loop header
LB: loop body
LE: loop exit
PB: predicated region body
PF: predicated region fallthrough
CT: control target
= control target key end

     0   :  { %13 = vsyncpa [#allocation3], 0  ;;  %s1160_s0 = inlined_call_operand.vmem [shape: f32[2,16,4], index: 0, kind: input, shape index: {}]   ;;  %s1161_s1 = inlined_call_operand.vmem [shape: s8[2,16,16], index: 1, kind: input, shape index: {}]   ;;  %s1162_s2 = inlined_call_operand.vmem [shape: f32[4,32], index: 2, kind: input, shape index: {}]   ;;  %s1163_s3 = inlined_call_operand.vmem [shape: f32[1,32], index: 3, kind: input, shape index: {}]   ;;  %s1164_s4 = inlined_call_operand.vmem [shape: f32[32,32], index: 4, kind: input, shape index: {}]   ;;  %s1165_s5 = inlined_call_operand.vmem [shape: f32[1,32], index: 5, kind: input, shape index: {}]   ;;  %s1166_s6 = inlined_call_operand.hbm [shape: f32[2,16,16], index: 6, kind: output, shape index: {0}]   ;;  %s1167_s7 = inlined_call_operand.hbm [shape: f32[2,16,16], index: 7, kind: output, shape index: {1}]  }
   0x1   :  { %15 = vsyncpa [#allocation3 + $0x1], 0 }
   0x2   :  { %16 = vsyncpa [#allocation5], 0 }
   0x3   :  { %18 = vsyncpa [#allocation5 + $0x1], 0  ;;  %s973_s24 = smov 0   ;;  %s975_s25 = smov 0  }
   0x4   :  { %s977_s26 = smov 0   ;;  %s979_s27 = smov 0  }
   0x5 LB: > { %s994_s28 = sadd.s32 4294967295, %s924_s27   ;;  %s717_s29 = sadd.s32 4294967294, %s924_s27   ;;  %s924_s27 = sphi %s979_s27, %s1175_s27   ;;  %s920_s26 = sphi %s977_s26, %s1174_s26   ;;  %s916_s25 = sphi %s975_s25, %s1173_s25   ;;  %s912_s24 = sphi %s973_s24, %s1172_s24  }
   0x6   : > { %s998_s30 = sadd.s32 1, %s924_s27   ;;  %s167_s8 = sadd.s32 1, %s920_s26 }
   0x7   : > { %s164_s9 = ssub.s32 %s924_s27, %s998_s30  ;;  %p177_p0 = scmp.ne.s32.totalorder %s920_s26, %s916_s25 }
   0x8   : > { %p165_p1 = scmp.eq.s32.totalorder %s164_s9, 0  ;;  %p178_p2 = scmp.eq.s32.totalorder %s994_s28, 1 }
   0x9   : > { %p183_p3 = scmp.ne.s32.totalorder %s916_s25, %s912_s24  ;;  %p184_p4 = scmp.eq.s32.totalorder %s717_s29, 1 }
   0xa   : > { %s1009_s10 = scalar_select %p165_p1, %s920_s26, %s167_s8  }
   0xb   : > { %p1011_p5 = por %p178_p2, %p177_p0  ;;  %p1015_p6 = por %p184_p4, %p183_p3 }
   0xc   : > { %p720_p7 = scmp.ge.s32.totalorder %s924_s27, 1  ;;  %p256_p8 = scmp.lt.s32.totalorder %s924_s27, 3 }
   0xe   : > { %p257_p9 = pnand %p720_p7, %p256_p8 }
   0xf   : > { %p298_p10 = scmp.lt.s32.totalorder (!%p257_p9), %s994_s28, 1  ;;  %s1060_s20 = sand.u32 (!%p257_p9), 1, %s916_s25  }
  0x10   : > { %260 = sbr.rel (%p257_p9) target bundleno = 1134 (0x46e), region = 44  ;;  %s1168_s9 = sshll.u32 (!%p257_p9), %s994_s28, 8 }
  0x11   : > { %s1077_s16 = scalar_lea.hbm (!%p257_p9), %s1166_s6, %s1168_s9  ;;  %s929_s19 = smov (!%p257_p9), [#allocation2]  }
  0x12   : > { %s838_s22 = sshll.u32 (!%p257_p9), %s929_s19, 4  ;;  %s839_s22 = int_to_ptr.vmem [resolvable:$false] %s838_s22 }
  0x13   : > { %s840_s23 = scalar_lea.vmem (!%p257_p9), %s839_s22, 512 }
  0x15   : > { %v314_v0 = vlaneseq  ;;  %s1023_s13 = scalar_select %p298_p10, %s994_s28, 1  ;;  %vm327_vm4 = vcmask 130048   ;;  %v926_v15 = vmov 0.0   ;;  %vm927_vm5 = vmmov 0   ;;  %v395_v27 = vld [vmem:[%s1162_s2] sm:$0xf] }
  0x16   : > { %755 = vmatprep.subr.bf16.mxu0 %v926_v15  ;;  %761 = vmatprep.subr.bf16.mxu1 %v926_v15  ;;  %v396_v28 = vpack.c.bf16 %v395_v27, %v395_v27  ;;  %vm401_vm6 = vcmask 1041408   ;;  %vm397_vm7 = vcmask 31744   ;;  %v730_v37 = vld [vmem:[%s1163_s3] ss:$0 sm:$0xff]  ;;  %v506_v49 = vld [vmem:[%s1164_s4 + $0x10] sm:$0xff]  ;;  %v507_v50 = vld [vmem:[%s1164_s4 + $0x18] sm:$0xff] }
  0x17   : > { %v315_v1 = vshrl.u32 %v314_v0, 7  ;;  %v318_v2 = vand.u32 127, %v314_v0  ;;  %s743_s14 = sshll.u32 %s1023_s13, 2  ;;  %757 = vmatprep.mubr.msk.bf16.mxu0 %vm927_vm5, %v926_v15  ;;  %763 = vmatprep.mubr.msk.bf16.mxu1 %vm927_vm5, %v926_v15  ;;  %s742_s18 = sshll.u32 %s1023_s13, 4  ;;  %v509_v51 = vpack.c.bf16 %v507_v50, %v506_v49  ;;  %v504_v52 = vld [vmem:[%s1164_s4] sm:$0xff]  ;;  %v505_v53 = vld [vmem:[%s1164_s4 + $0x8] sm:$0xff] }
  0x18   : > { %s307_s17 = scalar_lea.vmem %s1161_s1, %s743_s14  ;;  %s302_s21 = scalar_lea.vmem %s1160_s0, %s742_s18  ;;  %v403_v29 = vsel %vm401_vm6, %v396_v28, 0  ;;  %v508_v54 = vpack.c.bf16 %v505_v53, %v504_v52  ;;  %vm510_vm8 = vcmask 261120   ;;  %v733_v62 = vld [vmem:[%s1165_s5] ss:$0 sm:$0xff] }
  0x19   : > { %vm319_vm0 = vcmp.eq.s32.totalorder %v315_v1, %v318_v2  ;;  %v316_v3 = vadd.s32 8, %v315_v1  ;;  %v310_v4 = vld [vmem:[%s307_s17] sm:$0x3]  ;;  %v311_v5 = vld [vmem:[%s307_s17 + $0x2] sm:$0x3]  ;;  %v339_v22 = vld [vmem:[%s302_s21 + $0x8] sm:$0xff]  ;;  %762 = vmatpush3.bf16.msra.mxu1 %v403_v29 }
  0x1a   : > { %vm321_vm1 = vmpackc.low %vm319_vm0, %vm319_vm0  ;;  %v312_v6 = vunpack.c.l.s8.bf16 %v310_v4  ;;  %v313_v7 = vunpack.c.l.s8.bf16 %v311_v5  ;;  %v338_v21 = vld [vmem:[%s302_s21] sm:$0xff]  ;;  %773 = vmatprep.subr.bf16.mxu1 %v926_v15  ;;  %s721_s21 = sshll.u32 %s1060_s20, 4  ;;  %s928_s13 = smov 112  }
  0x1b   : > { %vm320_vm2 = vcmp.eq.s32.totalorder %v316_v3, %v318_v2  ;;  %s290_s29 = scalar_lea.vmem [#allocation2], %s721_s21  ;;  %s577_s17 = scalar_lea.sflag [#allocation3], %s1060_s20 }
  0x1c   : > { %vm322_vm3 = vmpackc.low %vm320_vm2, %vm320_vm2  ;;  %v323_v8 = vsel %vm321_vm1, 1065369472, %v312_v6  ;;  %s595_s8 = sshll.u32 %s290_s29, 4  ;;  %s1070_s8 = int_to_ptr.vmem [resolvable:$true] %s595_s8 }
  0x1d   : > { %v324_v9 = vsel %vm322_vm3, 1065369472, %v313_v7  ;;  %v325_v10 = vunpack.c.l.bf16 %v323_v8  ;;  %s834_s18 = scalar_lea.vmem %s1070_s8, 256  ;;  %p841_p0 = scmp.lt.s32.totalorder %s1070_s8, %s839_s22 }
  0x1e   : > { %v326_v11 = vunpack.c.l.bf16 %v324_v9  ;;  %v727_v12 = vcombine.low %v323_v8, %v324_v9  ;;  %p835_p11 = scmp.ne.s32.totalorder %s1070_s8, %s834_s18  ;;  %p842_p1 = scmp.lt.s32.totalorder %s840_s23, %s834_s18 }
  0x1f   : > { %v328_v13 = vsel %vm327_vm4, %v325_v10, 0.0 }
  0x20   : > { %329 = vadd.xlane.f32.xlu0 %v328_v13  ;;  %v331_v14 = vsel %vm327_vm4, %v326_v11, 0.0  ;;  %p836_p12 = pnand %p835_p11, %p1011_p5  ;;  %p843_p2 = por %p842_p1, %p841_p0 }
  0x22   : > { %p837_p13 = pneg %p836_p12 }
  0x24   : > { %332 = vadd.xlane.f32.xlu0 %v331_v14  ;;  %p844_p3 = pnand %p843_p2, %p837_p13 }
  0xa9   : > { %v330_v16 = vpop.xlane.xlu0 %329 }
  0xaa   : > { %v334_v17 = vmax.f32 %v330_v16, 1.0 }
  0xac   : > { %830 = vrsqrt.f32 %v334_v17 }
  0xad   : > { %v333_v18 = vpop.xlane.xlu0 %332 }
  0xae   : > { %v335_v19 = vmax.f32 %v333_v18, 1.0 }
  0xb0   : > { %832 = vrsqrt.f32 %v335_v19 }
  0xb9   : > { %v831_v20 = vpop.eup %830 }
  0xba   : > { %v340_v24 = vmul.f32 %v831_v20, %v338_v21 }
  0xbd   : > { %v833_v23 = vpop.eup %832 }
  0xbe   : > { %v341_v25 = vmul.f32 %v833_v23, %v339_v22 }
  0xc0   : > { %v342_v26 = vpack.c.bf16 %v341_v25, %v340_v24 }
  0xc2   : > { %756 = vmatpush3.bf16.msra.mxu0 %v342_v26 }
  0xc3   : > { %767 = vmatprep.subr.bf16.mxu0 %v926_v15 }
  0xc5   : > { %758 = vmatmul.mubr.msk.bf16.vlgmr.msra.gmra.mxu0 %vm327_vm4, %v727_v12 }
  0xc6   : > { %769 = vmatprep.mubr.msk.bf16.mxu0 %vm927_vm5, %v926_v15 }
 0x185   : > { %v385_v30 = vpop.f32.mrf.mxu0 }
 0x186   : > { %v392_v33 = vmul.f32 %v831_v20, %v385_v30 }
 0x187   : > { %v759_v31 = vpop.f32.mrf.mxu0 }
 0x189   : > { %v388_v32 = vpop.f32.mrf.mxu0 }
 0x18a   : > { %v393_v34 = vmul.f32 %v833_v23, %v388_v32 }
 0x18b   : > { %v760_v35 = vpop.f32.mrf.mxu0 }
 0x18c   : > { %v394_v36 = vpack.c.bf16 %v393_v34, %v392_v33 }
 0x18e   : > { %764 = vmatmul.mubr.msk.bf16.vlgmr.msra.gmra.mxu1 %vm397_vm7, %v394_v36 }
 0x18f   : > { %777 = vmatprep.mubr.msk.bf16.mxu1 %vm927_vm5, %v926_v15  ;;  %774 = vmatpush3.bf16.msra.mxu1 %v509_v51 }
 0x190   : > { %775 = vmatprep.subr.bf16.mxu1 %v926_v15 }
 0x193   : > { %776 = vmatpush3.bf16.msra.mxu1 %v508_v54 }
 0x24e   : > { %v439_v38 = vpop.f32.mrf.mxu1 }
 0x24f   : > { %v453_v39 = vadd.f32 %v730_v37, %v439_v38 }
 0x250   : > { %v765_v40 = vpop.f32.mrf.mxu1 }
 0x251   : > { %v455_v42 = vmax.f32 %v453_v39, 0.0 }
 0x252   : > { %v442_v41 = vpop.f32.mrf.mxu1 }
 0x253   : > { %v454_v43 = vadd.f32 %v730_v37, %v442_v41  ;;  %v457_v46 = vmul.f32 %v831_v20, %v455_v42 }
 0x254   : > { %v766_v44 = vpop.f32.mrf.mxu1 }
 0x255   : > { %v456_v45 = vmax.f32 %v454_v43, 0.0 }
 0x257   : > { %v458_v47 = vmul.f32 %v833_v23, %v456_v45 }
 0x259   : > { %v459_v48 = vpack.c.bf16 %v458_v47, %v457_v46 }
 0x25b   : > { %768 = vmatpush3.bf16.msra.mxu0 %v459_v48 }
 0x25e   : > { %770 = vmatmul.mubr.msk.bf16.vlgmr.msra.gmra.mxu0 %vm327_vm4, %v727_v12 }
 0x31e   : > { %v494_v55 = vpop.f32.mrf.mxu0 }
 0x31f   : > { %v501_v58 = vmul.f32 %v831_v20, %v494_v55 }
 0x320   : > { %v771_v56 = vpop.f32.mrf.mxu0 }
 0x322   : > { %v497_v57 = vpop.f32.mrf.mxu0 }
 0x323   : > { %v502_v59 = vmul.f32 %v833_v23, %v497_v57 }
 0x324   : > { %v772_v60 = vpop.f32.mrf.mxu0 }
 0x325   : > { %v503_v61 = vpack.c.bf16 %v502_v59, %v501_v58 }
 0x327   : > { %778 = vmatmul.mubr.msk.bf16.vlgmr.msra.gmra.mxu1 %vm510_vm8, %v503_v61 }
 0x3e7   : > { %v548_v63 = vpop.f32.mrf.mxu1 }
 0x3e8   : > { %v562_v0 = vadd.f32 %v733_v62, %v548_v63 }
 0x3e9   : > { %v779_v1 = vpop.f32.mrf.mxu1 }
 0x3ea   : > { %564 = vst.msk [vmem:[%s290_s29] sm:$0xff] %vm327_vm4, %v562_v0  ;;  %568 = vrot.lane.b32.xlu1 %v562_v0, %s928_s13 }
 0x3eb   : > { %v551_v2 = vpop.f32.mrf.mxu1 }
 0x3ec   : > { %v563_v3 = vadd.f32 %v733_v62, %v551_v2 }
 0x3ed   : > { %v780_v4 = vpop.f32.mrf.mxu1 }
 0x3ee   : > { %565 = vst.msk [vmem:[%s290_s29 + $0x8] sm:$0xff] %vm327_vm4, %v563_v3  ;;  %570 = vrot.lane.b32.xlu1 %v563_v3, %s928_s13 }
 0x3ef   : > { %847 = shalt.err (!%p844_p3)
}
 0x3f0   : > { %s848_s29 = scalar_lea.hbm %s1077_s16, 256  ;;  %s852_s15 = scalar_lea.hbm %s1166_s6, 512 }
 0x3f1   : > { %p849_p4 = scmp.ne.s32.totalorder %s1077_s16, %s848_s29  ;;  %p853_p9 = scmp.lt.s32.totalorder %s1077_s16, %s1166_s6 }
 0x3f2   : > { %p854_p10 = scmp.lt.s32.totalorder %s852_s15, %s848_s29 }
 0x3f3   : > { %p850_p7 = pnand %p849_p4, %p1011_p5 }
 0x3f4   : > { %p855_p11 = por %p854_p10, %p853_p9 }
 0x3f5   : > { %p851_p8 = pneg %p850_p7 }
 0x3f7   : > { %p856_p12 = pnand %p855_p11, %p851_p8 }
 0x3f9   : > { %859 = shalt.err (!%p856_p12)
}
 0x3fa   : > { %s930_s18 = smov 128   ;;  %s931_s22 = smov 8  }
 0x3fb   : > { %781 = dma.vmem_to_hbm [thread:$0]  (%p1011_p5), %s1070_s8, 256, %s1077_s16, %s577_s17, %s930_s18, %s930_s18, %s931_s22  }
 0x3fc   : > { %s297_s9 = scalar_lea.vmem [#allocation4], %s721_s21  ;;  %s1171_s29 = sshll.u32 %s994_s28, 8 }
 0x3fd   : > { %s611_s23 = sshll.u32 %s297_s9, 4  ;;  %s1116_s15 = scalar_lea.hbm %s1167_s7, %s1171_s29  ;;  %s1109_s23 = int_to_ptr.vmem [resolvable:$true] %s611_s23 }
 0x3fe   : > { %s582_s8 = scalar_lea.sflag [#allocation5], %s1060_s20  ;;  %s860_s21 = scalar_lea.vmem %s1109_s23, 256 }
 0x3ff   : > { %p861_p13 = scmp.ne.s32.totalorder %s1109_s23, %s860_s21  ;;  %s932_s16 = smov [#allocation4]  }
 0x400   : > { %s864_s17 = sshll.u32 %s932_s16, 4  ;;  %s865_s17 = int_to_ptr.vmem [resolvable:$false] %s864_s17 }
 0x401   : > { %p862_p0 = pnand %p861_p13, %p1011_p5  ;;  %s866_s28 = scalar_lea.vmem %s865_s17, 512 }
 0x402   : > { %p867_p2 = scmp.lt.s32.totalorder %s1109_s23, %s865_s17  ;;  %p868_p3 = scmp.lt.s32.totalorder %s866_s28, %s860_s21 }
 0x403   : > { %p863_p1 = pneg %p862_p0 }
 0x404   : > { %p869_p4 = por %p868_p3, %p867_p2 }
 0x406   : > { %p870_p7 = pnand %p869_p4, %p863_p1 }
 0x45c   : > { %v569_v5 = vpop.permute.xlu1 %568 }
 0x45d   : > { %574 = vst.msk [vmem:[%s297_s9] sm:$0xff] %vm327_vm4, %v569_v5 }
 0x460   : > { %v571_v6 = vpop.permute.xlu1 %570 }
 0x461   : > { %575 = vst.msk [vmem:[%s297_s9 + $0x8] sm:$0xff] %vm327_vm4, %v571_v6 }
 0x462   : > { %873 = shalt.err (!%p870_p7)
}
 0x463   : > { %s874_s19 = scalar_lea.hbm %s1116_s15, 256  ;;  %s878_s29 = scalar_lea.hbm %s1167_s7, 512 }
 0x464   : > { %p875_p8 = scmp.ne.s32.totalorder %s1116_s15, %s874_s19  ;;  %p879_p11 = scmp.lt.s32.totalorder %s1116_s15, %s1167_s7 }
 0x465   : > { %p880_p12 = scmp.lt.s32.totalorder %s878_s29, %s874_s19 }
 0x466   : > { %p876_p9 = pnand %p875_p8, %p1011_p5 }
 0x467   : > { %p881_p13 = por %p880_p12, %p879_p11 }
 0x468   : > { %p877_p10 = pneg %p876_p9 }
 0x46a   : > { %p882_p0 = pnand %p881_p13, %p877_p10 }
 0x46c   : > { %885 = shalt.err (!%p882_p0)
}
 0x46d   : > { %782 = dma.vmem_to_hbm [thread:$0]  (%p1011_p5), %s1109_s23, 256, %s1116_s15, %s582_s8, %s930_s18, %s930_s18, %s931_s22  }
 0x46e PF: > { %p792_p1 = scmp.ge.s32.totalorder %s924_s27, 2  ;;  %s626_s21 = sand.u32 1, %s912_s24  }
 0x46f   : > { %s627_s16 = scalar_lea.sflag [#allocation3], %s626_s21 }
 0x470   : > { %p786_p2 = pnand %p792_p1, %p1015_p6 }
 0x472   : > { %p787_p3 = pneg %p786_p2 }
 0x474   : > { %903 = dma.done.wait (%p787_p3), %s627_s16, 256  }
 0x475   : > { %905 = vsyncadd (%p787_p3), %s627_s16, 4294967040  ;;  %s636_s17 = scalar_lea.sflag [#allocation5], %s626_s21 }
 0x476   : > { %907 = dma.done.wait (%p787_p3), %s636_s17, 256  }
 0x477   : > { %909 = vsyncadd (%p787_p3), %s636_s17, 4294967040  ;;  %p21_p5 = scmp.ge.s32.totalorder %s998_s30, 4   ;;  %s1172_s24 = smov %s916_s25 }
 0x478   : > { %s1173_s25 = smov %s920_s26  ;;  %s1174_s26 = smov %s1009_s10 }
 0x479   : > { %s1175_s27 = smov %s998_s30  ;;  %23 = sbr.rel (!%p21_p5) target bundleno = 5 (0x5), region = 99 }
 0x47e   :  { %641 = vsyncpa [#allocation3], 1 }
 0x47f   :  { %643 = vsyncpa [#allocation3 + $0x1], 1 }
 0x480   :  { %644 = vsyncpa [#allocation5], 1 }
 0x481   :  { %646 = vsyncpa [#allocation5 + $0x1], 1 }

</bundles_post_ra>
